<compile_context>
chip_gen: v6e
topology: v6e:2x2x1
jax: 0.10.0
libtpu: 0.0.40
codegen_flags: <defaults>
</compile_context>

<pallas_src>
import jax
import jax.numpy as jnp
from jax.experimental import pallas as pl
from jax.experimental.pallas import tpu as pltpu


_DEFAULT_BLOCK_BUDGET = 4 * 1024 * 1024  # ~4 MiB per block; 4x (double-buffered
                                         # in+out) stays well under 32 MiB scoped
                                         # VMEM on v5e/v6e/v7x.
_VMEM_LIMIT_BYTES = 32 * 1024 * 1024     # <= default scoped on v6e/v7x, raises v5e's
                                         # 16 MiB default; far below physical VMEM.


def _actnorm_kernel(x_ref, loc_ref, scale_ref, h_ref):
    # x_ref: (t_r, t_c).  loc_ref/scale_ref: (t_r, 1) (NCHW path, broadcast over
    # lanes) or (1, t_c) (2-D path, broadcast over sublanes).
    h_ref[...] = (scale_ref[...] * (x_ref[...] + loc_ref[...])).astype(h_ref.dtype)


def _pick_tiles(rows, cols, itemsize, budget_bytes):
    """Pick a lane-dense (t_r, t_c) block of roughly `budget_bytes`.

    Every choice satisfies the (8,128) BlockSpec rule: each dim is either the
    full array extent or a multiple of 8 (sublanes) / 128 (lanes).  Blocks need
    not divide the array; Pallas masks the final partial tile.
    """
    # Lane tile: full cols if it fits (full-dim is always legal), else a large
    # multiple of 128 (last tile partial / masked).
    max_lanes = max(128, (budget_bytes // (8 * itemsize)) // 128 * 128)
    t_c = cols if cols <= max_lanes else max_lanes
    # Row tile: fill the remaining budget, full rows if they fit, else a
    # multiple of 8.
    max_rows = max(8, (budget_bytes // (t_c * itemsize)) // 8 * 8)
    t_r = rows if rows <= max_rows else max_rows
    return t_r, t_c


def _run_elementwise(x2, loc_b, scale_b, param_index_map, rows, cols,
                     budget_bytes):
    itemsize = jnp.dtype(x2.dtype).itemsize
    t_r, t_c = _pick_tiles(rows, cols, itemsize, budget_bytes)
    grid = (pl.cdiv(rows, t_r), pl.cdiv(cols, t_c))

    x_spec = pl.BlockSpec((t_r, t_c), lambda i, j: (i, j))
    p_spec = pl.BlockSpec(
        (t_r if loc_b.shape[1] == 1 else 1,
         1 if loc_b.shape[1] == 1 else t_c),
        param_index_map)

    return pl.pallas_call(
        _actnorm_kernel,
        out_shape=jax.ShapeDtypeStruct((rows, cols), x2.dtype),
        grid_spec=pltpu.PrefetchScalarGridSpec(
            num_scalar_prefetch=0,
            grid=grid,
            in_specs=[x_spec, p_spec, p_spec],
            out_specs=x_spec,
        ),
        compiler_params=pltpu.CompilerParams(
            dimension_semantics=("parallel", "parallel"),
            vmem_limit_bytes=_VMEM_LIMIT_BYTES),
        cost_estimate=pl.CostEstimate(
            flops=2 * rows * cols,
            transcendentals=0,
            bytes_accessed=2 * rows * cols * itemsize + 4 * rows * itemsize),
    )(x2, loc_b, scale_b)


def actnorm_forward(x, loc, scale, logdet=False,
                    block_budget_bytes=_DEFAULT_BLOCK_BUDGET):
    """ActNorm forward. x: (N, C, H, W) or (N, C). loc/scale: (1, C, 1, 1)."""
    orig_2d = (x.ndim == 2)
    if orig_2d:
        N, C = x.shape
        H = W = 1
        rows, cols = N, C
        x2 = x
        # Params broadcast over rows (batch); per-lane (channel) values.
        loc_b = loc.reshape(1, C).astype(x.dtype)
        scale_b = scale.reshape(1, C).astype(x.dtype)
        param_index_map = lambda i, j: (0, j)
    else:
        N, C, H, W = x.shape
        rows, cols = N * C, H * W
        x2 = x.reshape(rows, cols)            # contiguous NCHW -> free reshape
        # Params broadcast over lanes (spatial); tiny per-row (N*C, 1) column.
        loc_b = jnp.tile(loc.reshape(C).astype(x.dtype), N)[:, None]
        scale_b = jnp.tile(scale.reshape(C).astype(x.dtype), N)[:, None]
        param_index_map = lambda i, j: (i, 0)

    h2 = _run_elementwise(x2, loc_b, scale_b, param_index_map, rows, cols,
                          block_budget_bytes)
    h = h2 if orig_2d else h2.reshape(N, C, H, W)

    if not logdet:
        return h

    # logdet = H*W * sum(log|scale|): identical for every batch element, so it
    # is one cheap C-length f32 reduction done here, not per grid step.
    log_abs_sum = jnp.sum(jnp.log(jnp.abs(scale.reshape(C).astype(jnp.float32))))
    ld = (jnp.float32(H * W) * log_abs_sum).astype(x.dtype)
    return h, jnp.full((x.shape[0],), ld, dtype=x.dtype)


def actnorm_reference(x, loc, scale, logdet=False):
    squeeze = False
    if x.ndim == 2:
        x = x[:, :, None, None]
        squeeze = True
    _, _, H, W = x.shape
    h = scale * (x + loc)
    if squeeze:
        h = h[:, :, 0, 0]
    if logdet:
        ld = H * W * jnp.sum(jnp.log(jnp.abs(scale)))
        return h, (ld * jnp.ones((x.shape[0],))).astype(x.dtype)
    return h


if __name__ == "__main__":
    key = jax.random.PRNGKey(0)
    k_x, k_loc, k_scale = jax.random.split(key, 3)

    N, C, H, W = 2, 4, 16, 16
    x = jax.random.normal(k_x, (N, C, H, W), dtype=jnp.float32)

    # Parameters have ActNorm.__init__ shapes (1, C, 1, 1); non-trivial values
    # so the affine path is actually exercised.
    loc = 0.1 * jax.random.normal(k_loc, (1, C, 1, 1), dtype=jnp.float32)
    scale = 1.0 + 0.1 * jax.random.normal(k_scale, (1, C, 1, 1), dtype=jnp.float32)

    # logdet=False path (module default).
    h = jax.block_until_ready(actnorm_forward(x, loc, scale, logdet=False))
    h_ref = actnorm_reference(x, loc, scale, logdet=False)
    assert jnp.allclose(h, h_ref, atol=1e-5, rtol=1e-5)

    # logdet=True path.
    h2, ld = actnorm_forward(x, loc, scale, logdet=True)
    h2 = jax.block_until_ready(h2)
    ld = jax.block_until_ready(ld)
    h2_ref, ld_ref = actnorm_reference(x, loc, scale, logdet=True)
    assert jnp.allclose(h2, h2_ref, atol=1e-5, rtol=1e-5)
    assert jnp.allclose(ld, ld_ref, atol=1e-4, rtol=1e-5)

    # Non-128-multiple spatial size (full-dim lane block, no pad/slice pass).
    x_odd = jax.random.normal(k_x, (N, C, 5, 7), dtype=jnp.float32)
    h_odd = jax.block_until_ready(actnorm_forward(x_odd, loc, scale, logdet=False))
    assert jnp.allclose(h_odd, actnorm_reference(x_odd, loc, scale),
                        atol=1e-5, rtol=1e-5)

    # 2D-input (squeeze) path (gridded; params broadcast over rows).
    x2d = jax.random.normal(k_x, (N, C), dtype=jnp.float32)
    h2d = jax.block_until_ready(actnorm_forward(x2d, loc, scale, logdet=False))
    assert jnp.allclose(h2d, actnorm_reference(x2d, loc, scale), atol=1e-5, rtol=1e-5)

    # Multi-tile grid with partial row + lane tiles (tiny block budget forces
    # grid=(2,2) and masked final tiles) to exercise the tiling/masking path.
    x_big = jax.random.normal(k_x, (4, 4, 24, 24), dtype=jnp.float32)
    h_big = jax.block_until_ready(
        actnorm_forward(x_big, loc, scale, logdet=False,
                        block_budget_bytes=16 * 1024))
    assert jnp.allclose(h_big, actnorm_reference(x_big, loc, scale),
                        atol=1e-5, rtol=1e-5)

    # TODO(synk): data-dependent initialize() (training-time mean/std buffer
    # update) and reverse() are stateful / separate paths in PyTorch; not part
    # of the inference forward implemented here.
    print("KERNEL_OK")
</pallas_src>

<mosaic_0001>
module attributes {stable_mosaic.version = 11 : i64} {
  func.func @_actnorm_kernel(%arg0: i32, %arg1: i32, %arg2: memref<8x256xf32, #tpu.memory_space<vmem>>, %arg3: memref<8x1xf32, #tpu.memory_space<vmem>>, %arg4: memref<8x1xf32, #tpu.memory_space<vmem>>, %arg5: memref<8x256xf32, #tpu.memory_space<vmem>>) attributes {dimension_semantics = [#tpu.dimension_semantics<parallel>, #tpu.dimension_semantics<parallel>], iteration_bounds = array<i64: 1, 1>, scalar_prefetch = 0 : i64, scratch_operands = 0 : i64, tpu.core_type = #tpu.core_type<tc>, window_params = [{transform_indices = @transform_0, window_bounds = array<i64: 8, 256>}, {transform_indices = @transform_1, window_bounds = array<i64: 8, 1>}, {transform_indices = @transform_2, window_bounds = array<i64: 8, 1>}, {transform_indices = @transform_3, window_bounds = array<i64: 8, 256>}]} {
    %c0 = arith.constant 0 : index
    %c0_0 = arith.constant 0 : index
    %0 = vector.load %arg4[%c0, %c0_0] : memref<8x1xf32, #tpu.memory_space<vmem>>, vector<8x1xf32>
    %c0_1 = arith.constant 0 : index
    %c0_2 = arith.constant 0 : index
    %1 = vector.load %arg2[%c0_1, %c0_2] : memref<8x256xf32, #tpu.memory_space<vmem>>, vector<8x256xf32>
    %c0_3 = arith.constant 0 : index
    %c0_4 = arith.constant 0 : index
    %2 = vector.load %arg3[%c0_3, %c0_4] : memref<8x1xf32, #tpu.memory_space<vmem>>, vector<8x1xf32>
    %3 = vector.broadcast %2 : vector<8x1xf32> to vector<8x256xf32>
    %4 = arith.addf %1, %3 : vector<8x256xf32>
    %5 = vector.broadcast %0 : vector<8x1xf32> to vector<8x256xf32>
    %6 = arith.mulf %5, %4 : vector<8x256xf32>
    %c0_5 = arith.constant 0 : index
    %c0_6 = arith.constant 0 : index
    %7 = vector.load %arg5[%c0_5, %c0_6] : memref<8x256xf32, #tpu.memory_space<vmem>>, vector<8x256xf32>
    tpu.vector_store %arg5[%c0_5, %c0_6], %6 {strides = array<i32>} : memref<8x256xf32, #tpu.memory_space<vmem>>, vector<8x256xf32>,
    return
  }
  func.func @transform_0(%arg0: i32, %arg1: i32) -> (i32, i32) {
    %c0_i32 = arith.constant 0 : i32
    return %arg0, %arg1 : i32, i32
  }
  func.func @transform_1(%arg0: i32, %arg1: i32) -> (i32, i32) {
    %c0_i32 = arith.constant 0 : i32
    %c0_i32_0 = arith.constant 0 : i32
    return %arg0, %c0_i32 : i32, i32
  }
  func.func @transform_2(%arg0: i32, %arg1: i32) -> (i32, i32) {
    %c0_i32 = arith.constant 0 : i32
    %c0_i32_0 = arith.constant 0 : i32
    return %arg0, %c0_i32 : i32, i32
  }
  func.func @transform_3(%arg0: i32, %arg1: i32) -> (i32, i32) {
    %c0_i32 = arith.constant 0 : i32
    return %arg0, %arg1 : i32, i32
  }
}

</mosaic_0001>

<bundles_post_ra>
// kernel: tpu_custom_call.1
= control target key start
LH: loop header
LB: loop body
LE: loop exit
PB: predicated region body
PF: predicated region fallthrough
CT: control target
= control target key end

     0   :  { %v74_v1 = vmov 0   ;;  %s111_s0 = inlined_call_operand.vmem [shape: f32[8,256], index: 0, kind: input, shape index: {}]   ;;  %s112_s1 = inlined_call_operand.vmem [shape: f32[8,1], index: 1, kind: input, shape index: {}]   ;;  %s113_s2 = inlined_call_operand.vmem [shape: f32[8,1], index: 2, kind: input, shape index: {}]   ;;  %s114_s3 = inlined_call_operand.hbm [shape: f32[8,256], index: 3, kind: output, shape index: {}]  }
   0x1   :  { %v18_v0 = vld [vmem:[%s112_s1] sm:$0xff]  ;;  %51 = vset.pattern.permute.xlu0 %v74_v1 }
   0x2   :  { %8 = vsyncpa [#allocation3], 0  ;;  %21 = vperm.xlu0 %51, %v18_v0   ;;  %v15_v2 = vld [vmem:[%s113_s2] sm:$0xff]  ;;  %v17_v5 = vld [vmem:[%s111_s0 + $0x8] sm:$0xff]  ;;  %s75_s20 = smov [#allocation2]  }
   0x3   :  { %v16_v4 = vld [vmem:[%s111_s0] sm:$0xff]  ;;  %s41_s1 = sshll.u32 %s75_s20, 4  ;;  %s42_s1 = int_to_ptr.vmem [resolvable:$true] %s41_s1 }
   0x4   :  { %s52_s2 = scalar_lea.vmem %s42_s1, 256  ;;  %p57_p1 = scmp.lt.s32.totalorder %s42_s1, %s42_s1 }
   0x5   :  { %p53_p0 = scmp.ne.s32.totalorder %s42_s1, %s52_s2  ;;  %p58_p2 = scmp.lt.s32.totalorder %s52_s2, %s52_s2 }
   0x6   :  { %28 = vperm.xlu0 %51, %v15_v2  }
   0x7   :  { %p59_p3 = por %p58_p2, %p57_p1 }
   0x9   :  { %p60_p4 = pnand %p59_p3, %p53_p0 }
  0x7d   :  { %v22_v3 = vpop.permute.xlu0 %21 }
  0x7e   :  { %v24_v6 = vadd.f32 %v22_v3, %v16_v4  ;;  %v25_v7 = vadd.f32 %v22_v3, %v17_v5 }
  0x81   :  { %v29_v8 = vpop.permute.xlu0 %28 }
  0x82   :  { %v31_v9 = vmul.f32 %v29_v8, %v24_v6  ;;  %v32_v10 = vmul.f32 %v29_v8, %v25_v7 }
  0x84   :  { %33 = vst [vmem:[#allocation2] sm:$0xff] %v31_v9  ;;  %34 = vst [vmem:[#allocation2 + $0x8] sm:$0xff] %v32_v10 }
  0x85   :  { %63 = shalt.err (!%p60_p4)
}
  0x86   :  { %44 = dma.vmem_to_hbm [thread:$0]  %s42_s1, 256, %s114_s3, [#allocation3]  }
  0x87   :  { %72 = dma.done.wait [#allocation3], 256  }
  0x88   :  { %73 = vsyncadd [#allocation3], 4294967040 }
  0x89   :  { %48 = vsyncpa [#allocation3], 1 }

</bundles_post_ra>
